<compile_context>
chip_gen: v7x
topology: tpu7x:2x2x1
jax: 0.10.0
libtpu: 0.0.40
codegen_flags: <defaults>
</compile_context>

<pallas_src>
import numpy as np
import jax
import jax.numpy as jnp
from jax.experimental import pallas as pl
from jax.experimental.pallas import tpu as pltpu

LANES = 128             # lane dimension of a vreg
MAX_BLOCK_ROWS = 2048   # rows per grid step (2048x128 int16 = 512 KiB/block)
ROW_ALIGN = 32          # int8 output tiles pack (32, 128); keep rows aligned

# Characters the original regexes key on (dates, money units, separators).
# TODO(synk): exact regex alternation semantics (date/money/phone patterns)
# have no Pallas equivalent; spans here are contiguous digit/unit runs.
_UNIT_CHARS = "년월일분기조억만천백원Qq.,-"


def _contiguous_ranges(codes):
    """Group sorted codepoints into inclusive (lo, hi) contiguous ranges."""
    codes = sorted(set(codes))
    ranges = []
    lo = hi = codes[0]
    for c in codes[1:]:
        if c == hi + 1:
            hi = c
        else:
            ranges.append((lo, hi))
            lo = hi = c
    ranges.append((lo, hi))
    return tuple(ranges)


_UNIT_RANGES = _contiguous_ranges([ord(c) for c in _UNIT_CHARS])
_DIGIT_LO, _DIGIT_HI = ord("0"), ord("9")


def _in_range_u32(c_u32, lo, hi):
    """Unsigned-subtract range check: one sub + one unsigned compare."""
    return (c_u32 - jnp.uint32(lo)) <= jnp.uint32(hi - lo)


def _or_tree(conds):
    """Balanced OR reduction (keeps short blocks from being latency-bound)."""
    while len(conds) > 1:
        nxt = [jnp.logical_or(conds[i], conds[i + 1])
               for i in range(0, len(conds) - 1, 2)]
        if len(conds) % 2:
            nxt.append(conds[-1])
        conds = nxt
    return conds[0]


def _classify_kernel(codes_ref, mask_ref):
    """Per-character classification.  mask bit0 = digit, bit1 = unit char."""
    c16 = codes_ref[...]                                   # (block_rows, 128) int16
    # zero-extend the 16-bit codepoints into a uint32 vreg once
    c = (c16.astype(jnp.int32) & 0xFFFF).astype(jnp.uint32)
    digit = _in_range_u32(c, _DIGIT_LO, _DIGIT_HI)
    conds = []
    for lo, hi in _UNIT_RANGES:                            # small static unroll, VPU-only
        if lo == hi:
            conds.append(c == jnp.uint32(lo))
        else:
            conds.append(_in_range_u32(c, lo, hi))
    unit = _or_tree(conds)
    m = digit.astype(jnp.int32) | (unit.astype(jnp.int32) << 1)
    mask_ref[...] = m.astype(jnp.int8)                     # fused int8 bitmask output


def _pick_block_rows(rows):
    """Largest multiple of ROW_ALIGN that divides `rows`, is <= MAX_BLOCK_ROWS,
    and (when possible) leaves >= 2 grid steps so the "parallel" axis can be
    sharded across both TensorCores on v7x."""
    upper = min(MAX_BLOCK_ROWS, rows // 2 if rows >= 2 * ROW_ALIGN else rows)
    upper = max(ROW_ALIGN, (upper // ROW_ALIGN) * ROW_ALIGN)
    for b in range(upper, ROW_ALIGN - 1, -ROW_ALIGN):
        if rows % b == 0:
            return b
    return ROW_ALIGN


def classify_codes(codes):
    """codes: (R, 128) int16 slab (raw uint16 codepoints bit-viewed as int16),
    R a multiple of 32.  Returns an (R, 128) int8 bitmask."""
    rows, lanes = codes.shape
    assert lanes == LANES, "codes must be lane-dense (R, 128)"
    assert rows % ROW_ALIGN == 0, "rows must be a multiple of 32"
    assert codes.dtype == jnp.int16
    block_rows = _pick_block_rows(rows)
    grid = (rows // block_rows,)
    return pl.pallas_call(
        _classify_kernel,
        out_shape=jax.ShapeDtypeStruct((rows, LANES), jnp.int8),
        grid_spec=pltpu.PrefetchScalarGridSpec(
            num_scalar_prefetch=0,
            grid=grid,
            in_specs=[pl.BlockSpec((block_rows, LANES), lambda i: (i, 0))],
            out_specs=pl.BlockSpec((block_rows, LANES), lambda i: (i, 0)),
        ),
        compiler_params=pltpu.CompilerParams(
            dimension_semantics=("parallel",)),
    )(codes)


def _encode_flat_u16(cps_u32):
    """Clamp astral-plane codepoints to 0xFFFF sentinel (matches nothing) and
    pad to an aligned (rows, 128) int16 slab."""
    n = cps_u32.size
    cps = np.minimum(cps_u32, np.uint32(0xFFFF)).astype(np.uint16)
    rows = -(-max(n, 1) // LANES)
    rows = -(-rows // ROW_ALIGN) * ROW_ALIGN
    padded = np.zeros(rows * LANES, dtype=np.uint16)   # pad codepoint 0 matches nothing
    padded[:n] = cps
    return jnp.asarray(padded.reshape(rows, LANES).view(np.int16)), n


class FindNumber:
    """Approximate Pallas-backed version of find_span.FindNumber.

    The kernel produces a per-character digit/number-context bitmask; host
    glue assembles contiguous runs that contain at least one digit.
    """

    # TODO(synk): Kkma POS tagging (NR numerals) has no Pallas equivalent.

    def __call__(self, text):
        return self.forward_batch([text])[0]

    def forward_batch(self, texts):
        """Classify many texts with one pallas_call + one D2H transfer."""
        cps_list = [np.frombuffer(t.encode("utf-32-le"), dtype=np.uint32)
                    for t in texts]
        lengths = np.array([a.size for a in cps_list], dtype=np.int64)
        offsets = np.concatenate(([0], np.cumsum(lengths)))
        total = int(offsets[-1])
        flat = (np.concatenate(cps_list) if total
                else np.zeros(0, dtype=np.uint32))

        codes, _ = _encode_flat_u16(flat)
        mask_dev = classify_codes(codes)

        rows_needed = max(1, -(-total // LANES))
        mask = np.asarray(
            jax.device_get(mask_dev[:rows_needed])).reshape(-1)[:total]

        return [self._assemble(t, mask[s:e])
                for t, s, e in zip(texts, offsets[:-1], offsets[1:])]

    @staticmethod
    def _assemble(text, mask):
        """O(runs) span assembly from the per-character bitmask."""
        digit = (mask & 1).astype(bool)
        unit = (mask & 2).astype(bool)
        rel = digit | unit
        spans = []
        if rel.size and rel.any():
            edges = np.diff(np.concatenate(
                ([False], rel, [False])).astype(np.int8))
            starts = np.flatnonzero(edges == 1)
            ends = np.flatnonzero(edges == -1)
            dcum = np.concatenate(([0], np.cumsum(digit, dtype=np.int64)))
            for s, e in zip(starts, ends):
                if dcum[e] > dcum[s]:          # run contains at least one digit
                    spans.append(text[int(s):int(e)])
        # mimic `list(set(...))` de-dup of the original (order-stable here)
        return list(dict.fromkeys(spans)), int(digit.sum())


if __name__ == "__main__":
    # Deterministic synthetic "text" built from PRNGKey(0): random draws from
    # a small alphabet of digits, Korean number-unit chars, and filler.
    # 64 rows x 128 lanes -> block_rows=32, grid=(2,) (exercises the dual-step
    # parallel grid).
    key = jax.random.PRNGKey(0)
    alphabet = np.array(
        [ord(c) for c in "0123456789년월일분기조억만원 가나다 ab"], dtype=np.uint32)
    total_rows = 2 * ROW_ALIGN
    idx = np.asarray(
        jax.random.randint(key, (total_rows * LANES,), 0, alphabet.shape[0]))
    codes_u16 = alphabet[idx].astype(np.uint16).reshape(total_rows, LANES)
    codes = jnp.asarray(codes_u16.view(np.int16))

    mask = classify_codes(codes)
    jax.block_until_ready(mask)

    # Also exercise the full batched text wrapper on representative strings
    # (one kernel launch + one D2H for the whole batch).
    texts = [
        "2023년 3분기 매출 1,234억 5,678만원, 전화 02-123-4567 흑자전환",
        "지난 2021년 12월 31일 영업이익 3조 4,500억원 기록",
    ]
    results = FindNumber().forward_batch(texts)
    spans0, ndigits0 = results[0]
    spans1, ndigits1 = results[1]
    assert ndigits0 > 0 and len(spans0) > 0
    assert ndigits1 > 0 and len(spans1) > 0

    print("KERNEL_OK")
</pallas_src>

<mosaic_0001>
module attributes {stable_mosaic.version = 11 : i64} {
  func.func @_classify_kernel(%arg0: i32, %arg1: memref<32x128xi16, #tpu.memory_space<vmem>>, %arg2: memref<32x128xi8, #tpu.memory_space<vmem>>) attributes {dimension_semantics = [#tpu.dimension_semantics<parallel>], iteration_bounds = array<i64: 2>, scalar_prefetch = 0 : i64, scratch_operands = 0 : i64, tpu.core_type = #tpu.core_type<tc>, window_params = [{transform_indices = @transform_0, window_bounds = array<i64: 32, 128>}, {transform_indices = @transform_1, window_bounds = array<i64: 32, 128>}]} {
    %c0 = arith.constant 0 : index
    %c0_0 = arith.constant 0 : index
    %0 = vector.load %arg1[%c0, %c0_0] : memref<32x128xi16, #tpu.memory_space<vmem>>, vector<32x128xi16>
    %1 = arith.extsi %0 : vector<32x128xi16> to vector<32x128xi32>
    %c65535_i32 = arith.constant 65535 : i32
    %2 = vector.broadcast %c65535_i32 : i32 to vector<32x128xi32>
    %3 = arith.andi %1, %2 : vector<32x128xi32>
    %c48_i32 = arith.constant 48 : i32
    %4 = vector.broadcast %c48_i32 : i32 to vector<32x128xi32>
    %5 = arith.subi %3, %4 : vector<32x128xi32>
    %c9_i32 = arith.constant 9 : i32
    %6 = vector.broadcast %c9_i32 : i32 to vector<32x128xi32>
    %7 = arith.cmpi ule, %5, %6 : vector<32x128xi32>
    %c44_i32 = arith.constant 44 : i32
    %8 = vector.broadcast %c44_i32 : i32 to vector<32x128xi32>
    %9 = arith.subi %3, %8 : vector<32x128xi32>
    %c2_i32 = arith.constant 2 : i32
    %10 = vector.broadcast %c2_i32 : i32 to vector<32x128xi32>
    %11 = arith.cmpi ule, %9, %10 : vector<32x128xi32>
    %c81_i32 = arith.constant 81 : i32
    %12 = vector.broadcast %c81_i32 : i32 to vector<32x128xi32>
    %13 = arith.cmpi eq, %3, %12 : vector<32x128xi32>
    %c113_i32 = arith.constant 113 : i32
    %14 = vector.broadcast %c113_i32 : i32 to vector<32x128xi32>
    %15 = arith.cmpi eq, %3, %14 : vector<32x128xi32>
    %c44592_i32 = arith.constant 44592 : i32
    %16 = vector.broadcast %c44592_i32 : i32 to vector<32x128xi32>
    %17 = arith.cmpi eq, %3, %16 : vector<32x128xi32>
    %c45380_i32 = arith.constant 45380 : i32
    %18 = vector.broadcast %c45380_i32 : i32 to vector<32x128xi32>
    %19 = arith.cmpi eq, %3, %18 : vector<32x128xi32>
    %c47564_i32 = arith.constant 47564 : i32
    %20 = vector.broadcast %c47564_i32 : i32 to vector<32x128xi32>
    %21 = arith.cmpi eq, %3, %20 : vector<32x128xi32>
    %c48177_i32 = arith.constant 48177 : i32
    %22 = vector.broadcast %c48177_i32 : i32 to vector<32x128xi32>
    %23 = arith.cmpi eq, %3, %22 : vector<32x128xi32>
    %c48516_i32 = arith.constant 48516 : i32
    %24 = vector.broadcast %c48516_i32 : i32 to vector<32x128xi32>
    %25 = arith.cmpi eq, %3, %24 : vector<32x128xi32>
    %c50613_i32 = arith.constant 50613 : i32
    %26 = vector.broadcast %c50613_i32 : i32 to vector<32x128xi32>
    %27 = arith.cmpi eq, %3, %26 : vector<32x128xi32>
    %c50896_i32 = arith.constant 50896 : i32
    %28 = vector.broadcast %c50896_i32 : i32 to vector<32x128xi32>
    %29 = arith.cmpi eq, %3, %28 : vector<32x128xi32>
    %c50900_i32 = arith.constant 50900 : i32
    %30 = vector.broadcast %c50900_i32 : i32 to vector<32x128xi32>
    %31 = arith.cmpi eq, %3, %30 : vector<32x128xi32>
    %c51068_i32 = arith.constant 51068 : i32
    %32 = vector.broadcast %c51068_i32 : i32 to vector<32x128xi32>
    %33 = arith.cmpi eq, %3, %32 : vector<32x128xi32>
    %c51312_i32 = arith.constant 51312 : i32
    %34 = vector.broadcast %c51312_i32 : i32 to vector<32x128xi32>
    %35 = arith.cmpi eq, %3, %34 : vector<32x128xi32>
    %c52380_i32 = arith.constant 52380 : i32
    %36 = vector.broadcast %c52380_i32 : i32 to vector<32x128xi32>
    %37 = arith.cmpi eq, %3, %36 : vector<32x128xi32>
    %38 = arith.ori %11, %13 : vector<32x128xi1>
    %39 = arith.ori %15, %17 : vector<32x128xi1>
    %40 = arith.ori %19, %21 : vector<32x128xi1>
    %41 = arith.ori %23, %25 : vector<32x128xi1>
    %42 = arith.ori %27, %29 : vector<32x128xi1>
    %43 = arith.ori %31, %33 : vector<32x128xi1>
    %44 = arith.ori %35, %37 : vector<32x128xi1>
    %45 = arith.ori %38, %39 : vector<32x128xi1>
    %46 = arith.ori %40, %41 : vector<32x128xi1>
    %47 = arith.ori %42, %43 : vector<32x128xi1>
    %48 = arith.ori %45, %46 : vector<32x128xi1>
    %49 = arith.ori %47, %44 : vector<32x128xi1>
    %50 = arith.ori %48, %49 : vector<32x128xi1>
    %51 = arith.extui %7 : vector<32x128xi1> to vector<32x128xi32>
    %52 = arith.extui %50 : vector<32x128xi1> to vector<32x128xi32>
    %c1_i32 = arith.constant 1 : i32
    %53 = vector.broadcast %c1_i32 : i32 to vector<32x128xi32>
    %54 = arith.shli %52, %53 : vector<32x128xi32>
    %55 = arith.ori %51, %54 : vector<32x128xi32>
    %56 = arith.trunci %55 : vector<32x128xi32> to vector<32x128xi8>
    %c0_1 = arith.constant 0 : index
    %c0_2 = arith.constant 0 : index
    %57 = vector.load %arg2[%c0_1, %c0_2] : memref<32x128xi8, #tpu.memory_space<vmem>>, vector<32x128xi8>
    tpu.vector_store %arg2[%c0_1, %c0_2], %56 {strides = array<i32>} : memref<32x128xi8, #tpu.memory_space<vmem>>, vector<32x128xi8>,
    return
  }
  func.func @transform_0(%arg0: i32) -> (i32, i32) {
    %c0_i32 = arith.constant 0 : i32
    %c0_i32_0 = arith.constant 0 : i32
    return %arg0, %c0_i32 : i32, i32
  }
  func.func @transform_1(%arg0: i32) -> (i32, i32) {
    %c0_i32 = arith.constant 0 : i32
    %c0_i32_0 = arith.constant 0 : i32
    return %arg0, %c0_i32 : i32, i32
  }
}

</mosaic_0001>

<bundles_post_ra>
// kernel: tpu_custom_call.1
= control target key start
LH: loop header
LB: loop body
LE: loop exit
PB: predicated region body
PF: predicated region fallthrough
CT: control target
= control target key end

     0   :  { %6 = vsyncpa [#allocation3], 0  ;;  %s1098_s0 = inlined_call_operand.hbm [shape: s16[64,128], index: 0, kind: input, shape index: {}]   ;;  %s1099_s1 = inlined_call_operand.hbm [shape: s8[64,128], index: 1, kind: output, shape index: {}]  }
   0x1   :  { %8 = vsyncpa [#allocation3 + $0x1], 0 }
   0x2   :  { %9 = vsyncpa [#allocation4], 0 }
   0x3   :  { %11 = vsyncpa [#allocation4 + $0x1], 0  ;;  %s565_s6 = smov 0   ;;  %s567_s7 = smov 0  }
   0x4   :  { %s569_s8 = smov 0   ;;  %s571_s9 = smov 0  }
   0x5 LB: > { %s586_s10 = sadd.s32 4294967295, %s548_s9   ;;  %s372_s11 = sadd.s32 4294967294, %s548_s9   ;;  %s548_s9 = sphi %s571_s9, %s1262_s9   ;;  %s544_s8 = sphi %s569_s8, %s1261_s8   ;;  %s540_s7 = sphi %s567_s7, %s1260_s7   ;;  %s536_s6 = sphi %s565_s6, %s1259_s6  }
   0x6   : > { %s590_s12 = sadd.s32 1, %s548_s9   ;;  %s24_s13 = sadd.s32 1, %s544_s8 }
   0x7   : > { %s21_s14 = ssub.s32 %s548_s9, %s590_s12  ;;  %p31_p0 = scmp.ne.s32.totalorder %s544_s8, %s540_s7 }
   0x8   : > { %p22_p1 = scmp.eq.s32.totalorder %s21_s14, 0  ;;  %p32_p2 = scmp.eq.s32.totalorder %s548_s9, 0 }
   0x9   : > { %p37_p3 = scmp.ne.s32.totalorder %s540_s7, %s536_s6  ;;  %p38_p4 = scmp.eq.s32.totalorder %s586_s10, 0 }
   0xa   : > { %s602_s15 = scalar_select %p22_p1, %s544_s8, %s24_s13  }
   0xb   : > { %p604_p5 = por %p32_p2, %p31_p0  ;;  %p608_p6 = por %p38_p4, %p37_p3 }
   0xc   : > { %p61_p7 = scmp.eq.s32.totalorder %s586_s10, 1  ;;  %p67_p8 = scmp.eq.s32.totalorder %s372_s11, 1 }
   0xd   : > { %p415_p10 = scmp.lt.s32.totalorder %s548_s9, 2  ;;  %s87_s20 = sand.u32 1, %s544_s8  }
   0xe   : > { %p615_p11 = por %p61_p7, %p31_p0  ;;  %p619_p12 = por %p67_p8, %p37_p3 }
   0xf   : > { %s393_s21 = sshll.u32 %s548_s9, 8  ;;  %s375_s22 = sshll.u32 %s87_s20, 4 }
  0x10   : > { %s1111_s18 = scalar_select %p615_p11, 1, 0 }
  0x11   : > { %s1112_s19 = scalar_select %p619_p12, 1, 0 }
  0x12   : > { %s628_s25 = scalar_lea.hbm %s1098_s0, %s393_s21  ;;  %s91_s26 = scalar_lea.vmem [#allocation2], %s375_s22 }
  0x13   : > { %s98_s27 = sshll.u32 %s91_s26, 4  ;;  %p632_p13 = pnand %p415_p10, %p604_p5  ;;  %s636_s27 = int_to_ptr.vmem [resolvable:$true] %s98_s27 }
  0x14   : > { %s638_s29 = scalar_lea.sflag [#allocation3], %s87_s20  ;;  %s452_s30 = scalar_lea.hbm %s628_s25, 256 }
  0x15   : > { %p453_p0 = scmp.ne.s32.totalorder %s628_s25, %s452_s30  ;;  %p454_p1 = pneg %p632_p13 }
  0x16   : > { %s457_s4 = scalar_lea.hbm %s1098_s0, 512  ;;  %p458_p4 = scmp.lt.u32.totalorder %s628_s25, %s1098_s0 }
  0x17   : > { %p455_p2 = pnand %p454_p1, %p453_p0  ;;  %p459_p5 = scmp.lt.u32.totalorder %s457_s4, %s452_s30 }
  0x18   : > { %p461_p8 = scmp.lt.u32.totalorder %s452_s30, %s628_s25 }
  0x19   : > { %p456_p3 = pneg %p455_p2  ;;  %p460_p7 = por %p459_p5, %p458_p4 }
  0x1b   : > { %p462_p10 = por %p461_p8, %p460_p7 }
  0x1d   : > { %p463_p9 = pnand %p462_p10, %p456_p3 }
  0x1f   : > { %466 = shalt.err (!%p463_p9)
}
  0x20   : > { %s467_s13 = scalar_lea.vmem %s636_s27, 256  ;;  %s550_s14 = smov [#allocation2]  }
  0x21   : > { %p468_p0 = scmp.ne.s32.totalorder %s636_s27, %s467_s13  ;;  %s472_s16 = sshll.u32 %s550_s14, 4  ;;  %s473_s16 = int_to_ptr.vmem [resolvable:$false] %s472_s16 }
  0x22   : > { %s474_s20 = scalar_lea.vmem %s473_s16, 512  ;;  %p475_p11 = scmp.lt.s32.totalorder %s636_s27, %s473_s16 }
  0x23   : > { %p470_p2 = pnand %p468_p0, %p454_p1  ;;  %p476_p4 = scmp.lt.s32.totalorder %s474_s20, %s467_s13 }
  0x25   : > { %p471_p12 = pneg %p470_p2  ;;  %p477_p5 = por %p476_p4, %p475_p11 }
  0x27   : > { %p478_p7 = pnand %p477_p5, %p471_p12 }
  0x29   : > { %481 = shalt.err (!%p478_p7)
}
  0x2a   : > { %s551_s21 = smov 64   ;;  %s552_s22 = smov 4  }
  0x2b   : > { %410 = dma.hbm_to_vmem [thread:$0]  (!%p632_p13), %s628_s25, 256, %s636_s27, %s638_s29, %s551_s21, %s551_s21, %s552_s22  }
  0x2c   : > { %p378_p9 = scmp.ge.s32.totalorder %s548_s9, 1  ;;  %p106_p1 = scmp.lt.s32.totalorder %s548_s9, 3 }
  0x2e   : > { %p107_p3 = pnand %p378_p9, %p106_p1 }
  0x2f   : > { %s669_s23 = sand.u32 (!%p107_p3), 1, %s540_s7  }
  0x30   : > { %110 = sbr.rel (%p107_p3) target bundleno = 138 (0x8a), region = 24  ;;  %s379_s24 = sshll.u32 (!%p107_p3), %s669_s23, 4 }
  0x31   : > { %s113_s26 = scalar_lea.sflag (!%p107_p3), [#allocation3], %s669_s23  ;;  %s116_s30 = scalar_lea.vmem (!%p107_p3), [#allocation2], %s379_s24 }
  0x37   : > { %527 = dma.done.wait (%p608_p6), %s113_s26, 256  }
  0x38   : > { %529 = vsyncadd (%p608_p6), %s113_s26, 4294967040  ;;  %v395_v0 = vld [vmem:[%s116_s30] sm:$0xff]   ;;  %v402_v1 = vld [vmem:[%s116_s30 + $0x8] sm:$0xff]   ;;  %v1114_v14 = vmov 0  ;;  %v1116_v15 = vmov 0  ;;  %v1118_v16 = vmov 0 }
  0x39   : > { %v396_v2 = vunpack.c.l.b16 %v395_v0  ;;  %v397_v3 = vunpack.c.h.b16 %v395_v0  ;;  %v400_v4 = vunpack.c.l.b16 %v402_v1  ;;  %v401_v5 = vunpack.c.h.b16 %v402_v1  ;;  %s380_s17 = sshll.u32 %s669_s23, 3  ;;  %s390_s28 = sshll.u32 %s586_s10, 7 }
  0x3a   : > { %v1121_v17 = vmov 0  ;;  %v1125_v18 = vmov 0  ;;  %v1127_v19 = vmov 0  ;;  %v1131_v20 = vmov 0  ;;  %s134_s25 = scalar_lea.vmem [#allocation5], %s380_s17  ;;  %s1056_s3 = scalar_lea.hbm %s1099_s1, %s390_s28 }
  0x3b   : > { %v677_v6 = vand.u32 65535, %v396_v2  ;;  %v679_v7 = vand.u32 65535, %v397_v3  ;;  %v681_v8 = vand.u32 65535, %v400_v4  ;;  %v683_v9 = vand.u32 65535, %v401_v5  ;;  %s302_s27 = sshll.u32 %s134_s25, 4  ;;  %s289_s4 = scalar_lea.sflag [#allocation4], %s669_s23  ;;  %s1051_s27 = int_to_ptr.vmem [resolvable:$true] %s302_s27 }
  0x3c   : > { %v1134_v21 = vmov 0  ;;  %v1138_v22 = vmov 0  ;;  %v1142_v23 = vmov 0  ;;  %v1146_v24 = vmov 0  ;;  %s482_s5 = scalar_lea.vmem %s1051_s27, 128  ;;  %p1256_p11 = scmp.ne.s32.totalorder %s1111_s18, 0 }
  0x3d   : > { %v385_v10 = vadd.s32 4294967252, %v677_v6  ;;  %v386_v11 = vadd.s32 4294967252, %v679_v7  ;;  %v387_v12 = vadd.s32 4294967252, %v681_v8  ;;  %v388_v13 = vadd.s32 4294967252, %v683_v9  ;;  %p483_p6 = scmp.ne.s32.totalorder %s1051_s27, %s482_s5  ;;  %s554_s10 = smov [#allocation5]  }
  0x3e   : > { %vm164_vm4 = vcmp.eq.s32.totalorder %v677_v6, 81  ;;  %vm165_vm5 = vcmp.eq.s32.totalorder %v679_v7, 81  ;;  %vm168_vm6 = vcmp.eq.s32.totalorder %v677_v6, 113  ;;  %vm172_vm7 = vcmp.eq.s32.totalorder %v677_v6, 44592  ;;  %s486_s11 = sshll.u32 %s554_s10, 4  ;;  %s487_s11 = int_to_ptr.vmem [resolvable:$false] %s486_s11 }
  0x3f   : > { %vm160_vm0 = vcmp.le.u32.totalorder %v385_v10, 2  ;;  %vm161_vm1 = vcmp.le.u32.totalorder %v386_v11, 2  ;;  %vm173_vm11 = vcmp.eq.s32.totalorder %v679_v7, 44592  ;;  %vm170_vm12 = vcmp.eq.s32.totalorder %v681_v8, 113  ;;  %vm714_vm13 = vmor %vm168_vm6, %vm172_vm7  ;;  %p484_p12 = pnand %p483_p6, %p1256_p11  ;;  %s488_s13 = scalar_lea.vmem %s487_s11, 256 }
  0x40   : > { %vm174_vm14 = vcmp.eq.s32.totalorder %v681_v8, 44592  ;;  %vm175_vm15 = vcmp.eq.s32.totalorder %v683_v9, 44592  ;;  %vm708_vm10 = vmor %vm160_vm0, %vm164_vm4  ;;  %v1117_v15 = vsel %vm714_vm13, 4294967295, %v1116_v15  ;;  %vm1120_vm4 = vcmp.eq.s32.totalorder %v679_v7, 113  ;;  %p489_p8 = scmp.lt.s32.totalorder %s1051_s27, %s487_s11  ;;  %p490_p10 = scmp.lt.s32.totalorder %s488_s13, %s482_s5 }
  0x41   : > { %v1115_v14 = vsel %vm708_vm10, 4294967295, %v1114_v14  ;;  %vm725_vm0 = vmor %vm161_vm1, %vm165_vm5  ;;  %vm1123_vm1 = vcmp.eq.s32.totalorder %v681_v8, 81  ;;  %vm1124_vm5 = vcmp.le.u32.totalorder %v387_v12, 2  ;;  %vm1137_vm3 = vcmp.eq.s32.totalorder %v677_v6, 45380  ;;  %p485_p13 = pneg %p484_p12 }
  0x42   : > { %v1119_v16 = vsel %vm725_vm0, 4294967295, %v1118_v16  ;;  %vm733_vm6 = vmor %vm1120_vm4, %vm173_vm11  ;;  %vm1136_vm4 = vcmp.eq.s32.totalorder %v677_v6, 47564  ;;  %v1150_v25 = vmov 0  ;;  %v1154_v26 = vmov 0  ;;  %p491_p0 = por %p490_p10, %p489_p8 }
  0x43   : > { %v1122_v17 = vsel %vm733_vm6, 4294967295, %v1121_v17  ;;  %vm744_vm2 = vmor %vm1124_vm5, %vm1123_vm1  ;;  %vm1129_vm1 = vcmp.eq.s32.totalorder %v683_v9, 81  ;;  %vm1130_vm5 = vcmp.le.u32.totalorder %v388_v13, 2  ;;  %v1158_v27 = vmov 0 }
  0x44   : > { %v1126_v18 = vsel %vm744_vm2, 4294967295, %v1125_v18  ;;  %vm752_vm11 = vmor %vm170_vm12, %vm174_vm14  ;;  %vm1133_vm12 = vcmp.eq.s32.totalorder %v683_v9, 113  ;;  %v1162_v28 = vmov 0  ;;  %v1166_v29 = vmov 0  ;;  %p492_p2 = pnand %p491_p0, %p485_p13 }
  0x45   : > { %v1128_v19 = vsel %vm752_vm11, 4294967295, %v1127_v19  ;;  %vm763_vm8 = vmor %vm1130_vm5, %vm1129_vm1  ;;  %vm1140_vm1 = vcmp.eq.s32.totalorder %v677_v6, 48516  ;;  %vm1141_vm5 = vcmp.eq.s32.totalorder %v677_v6, 48177  ;;  %vm195_vm2 = vcmp.eq.s32.totalorder %v683_v9, 50613 }
  0x46   : > { %v1132_v20 = vsel %vm763_vm8, 4294967295, %v1131_v20  ;;  %vm771_vm14 = vmor %vm1133_vm12, %vm175_vm15  ;;  %vm194_vm15 = vcmp.eq.s32.totalorder %v681_v8, 50613  ;;  %vm198_vm12 = vcmp.eq.s32.totalorder %v681_v8, 50896  ;;  %vm202_vm8 = vcmp.eq.s32.totalorder %v681_v8, 50900 }
  0x47   : > { %v1135_v21 = vsel %vm771_vm14, 4294967295, %v1134_v21  ;;  %vm779_vm7 = vmor %vm1137_vm3, %vm1136_vm4  ;;  %vm1144_vm3 = vcmp.eq.s32.totalorder %v679_v7, 47564  ;;  %vm1145_vm4 = vcmp.eq.s32.totalorder %v679_v7, 45380  ;;  %vm206_vm14 = vcmp.eq.s32.totalorder %v681_v8, 51068 }
  0x48   : > { %v1139_v22 = vsel %vm779_vm7, 4294967295, %v1138_v22  ;;  %vm787_vm9 = vmor %vm1141_vm5, %vm1140_vm1  ;;  %vm1148_vm1 = vcmp.eq.s32.totalorder %v679_v7, 48516  ;;  %vm1149_vm5 = vcmp.eq.s32.totalorder %v679_v7, 48177  ;;  %vm199_vm11 = vcmp.eq.s32.totalorder %v683_v9, 50896 }
  0x49   : > { %v1143_v23 = vsel %vm787_vm9, 4294967295, %v1142_v23  ;;  %vm799_vm7 = vmor %vm1145_vm4, %vm1144_vm3  ;;  %vm1152_vm3 = vcmp.eq.s32.totalorder %v681_v8, 47564  ;;  %vm1153_vm4 = vcmp.eq.s32.totalorder %v681_v8, 45380  ;;  %vm203_vm0 = vcmp.eq.s32.totalorder %v683_v9, 50900 }
  0x4a   : > { %v1147_v24 = vsel %vm799_vm7, 4294967295, %v1146_v24  ;;  %vm807_vm9 = vmor %vm1149_vm5, %vm1148_vm1  ;;  %vm1156_vm1 = vcmp.eq.s32.totalorder %v681_v8, 48516  ;;  %vm1157_vm5 = vcmp.eq.s32.totalorder %v681_v8, 48177  ;;  %vm207_vm6 = vcmp.eq.s32.totalorder %v683_v9, 51068 }
  0x4b   : > { %v1151_v25 = vsel %vm807_vm9, 4294967295, %v1150_v25  ;;  %vm819_vm7 = vmor %vm1153_vm4, %vm1152_vm3  ;;  %vm1160_vm3 = vcmp.eq.s32.totalorder %v683_v9, 47564  ;;  %vm1161_vm4 = vcmp.eq.s32.totalorder %v683_v9, 45380  ;;  %v1170_v30 = vmov 0 }
  0x4c   : > { %v1155_v26 = vsel %vm819_vm7, 4294967295, %v1154_v26  ;;  %vm827_vm9 = vmor %vm1157_vm5, %vm1156_vm1  ;;  %vm1164_vm1 = vcmp.eq.s32.totalorder %v683_v9, 48516  ;;  %vm1165_vm5 = vcmp.eq.s32.totalorder %v683_v9, 48177  ;;  %v1174_v31 = vmov 0 }
  0x4d   : > { %v1159_v27 = vsel %vm827_vm9, 4294967295, %v1158_v27  ;;  %vm839_vm7 = vmor %vm1161_vm4, %vm1160_vm3  ;;  %vm1168_vm3 = vcmp.eq.s32.totalorder %v677_v6, 50896  ;;  %vm1169_vm4 = vcmp.eq.s32.totalorder %v677_v6, 50613  ;;  %vm1176_vm10 = vcmp.eq.s32.totalorder %v679_v7, 50896 }
  0x4e   : > { %v1163_v28 = vsel %vm839_vm7, 4294967295, %v1162_v28  ;;  %vm847_vm9 = vmor %vm1165_vm5, %vm1164_vm1  ;;  %vm1172_vm1 = vcmp.eq.s32.totalorder %v677_v6, 51068  ;;  %vm1173_vm5 = vcmp.eq.s32.totalorder %v677_v6, 50900  ;;  %vm1177_vm13 = vcmp.eq.s32.totalorder %v679_v7, 50613 }
  0x4f   : > { %v1167_v29 = vsel %vm847_vm9, 4294967295, %v1166_v29  ;;  %vm859_vm7 = vmor %vm1169_vm4, %vm1168_vm3  ;;  %v1178_v32 = vmov 0  ;;  %vm1180_vm4 = vcmp.eq.s32.totalorder %v679_v7, 51068  ;;  %v1182_v33 = vmov 0 }
  0x50   : > { %v1171_v30 = vsel %vm859_vm7, 4294967295, %v1170_v30  ;;  %vm867_vm9 = vmor %vm1173_vm5, %vm1172_vm1  ;;  %vm1181_vm7 = vcmp.eq.s32.totalorder %v679_v7, 50900  ;;  %v1184_v34 = vmov 0  ;;  %v1186_v35 = vmov 0 }
  0x51   : > { %v1175_v31 = vsel %vm867_vm9, 4294967295, %v1174_v31  ;;  %vm875_vm3 = vmor %vm1177_vm13, %vm1176_vm10  ;;  %v1188_v36 = vmov 0  ;;  %v1190_v37 = vmov 0  ;;  %v1202_v38 = vmov 0 }
  0x52   : > { %v1179_v32 = vsel %vm875_vm3, 4294967295, %v1178_v32  ;;  %vm883_vm1 = vmor %vm1181_vm7, %vm1180_vm4  ;;  %vm214_vm7 = vcmp.eq.s32.totalorder %v681_v8, 52380  ;;  %vm1205_vm3 = vnez %v1147_v24  ;;  %v1206_v39 = vmov 0 }
  0x53   : > { %v1183_v33 = vsel %vm883_vm1, 4294967295, %v1182_v33  ;;  %vm887_vm5 = vmor %vm194_vm15, %vm198_vm12  ;;  %vm208_vm12 = vcmp.eq.s32.totalorder %v677_v6, 51312  ;;  %vm210_vm15 = vcmp.eq.s32.totalorder %v681_v8, 51312  ;;  %vm211_vm1 = vcmp.eq.s32.totalorder %v683_v9, 51312 }
  0x54   : > { %v1185_v34 = vsel %vm887_vm5, 4294967295, %v1184_v34  ;;  %vm891_vm9 = vmor %vm202_vm8, %vm206_vm14  ;;  %vm212_vm8 = vcmp.eq.s32.totalorder %v677_v6, 52380  ;;  %vm1201_vm14 = vnez %v1139_v22  ;;  %vm215_vm5 = vcmp.eq.s32.totalorder %v683_v9, 52380 }
  0x55   : > { %v1187_v35 = vsel %vm891_vm9, 4294967295, %v1186_v35  ;;  %vm895_vm10 = vmor %vm195_vm2, %vm199_vm11  ;;  %vm1200_vm11 = vnez %v1143_v23  ;;  %v1210_v40 = vmov 0  ;;  %v1214_v41 = vmov 0 }
  0x56   : > { %v1189_v36 = vsel %vm895_vm10, 4294967295, %v1188_v36  ;;  %vm899_vm13 = vmor %vm203_vm0, %vm207_vm6  ;;  %vm209_vm10 = vcmp.eq.s32.totalorder %v679_v7, 51312  ;;  %vm213_vm0 = vcmp.eq.s32.totalorder %v679_v7, 52380  ;;  %v1227_v42 = vmov 0 }
  0x57   : > { %v1191_v37 = vsel %vm899_vm13, 4294967295, %v1190_v37  ;;  %vm248_vm2 = vmor %vm1201_vm14, %vm1200_vm11  ;;  %vm1204_vm13 = vnez %v1151_v25  ;;  %vm1208_vm11 = vnez %v1159_v27  ;;  %vm1209_vm14 = vnez %v1155_v26 }
  0x58   : > { %vm931_vm6 = vmor %vm208_vm12, %vm212_vm8  ;;  %v381_v44 = vadd.s32 4294967248, %v677_v6  ;;  %v382_v46 = vadd.s32 4294967248, %v679_v7  ;;  %v1242_v47 = vmov 0  ;;  %v383_v48 = vadd.s32 4294967248, %v681_v8 }
  0x59   : > { %v1203_v38 = vsel %vm931_vm6, 4294967295, %v1202_v38  ;;  %vm249_vm4 = vmor %vm1205_vm3, %vm1204_vm13  ;;  %vm1212_vm6 = vnez %v1167_v29  ;;  %vm1213_vm3 = vnez %v1163_v28  ;;  %v384_v49 = vadd.s32 4294967248, %v683_v9 }
  0x5a   : > { %vm939_vm9 = vmor %vm209_vm10, %vm213_vm0  ;;  %vm1216_vm10 = vnez %v1175_v31  ;;  %v553_v53 = vmov 0  }
  0x5b   : > { %v1207_v39 = vsel %vm939_vm9, 4294967295, %v1206_v39  ;;  %vm250_vm8 = vmor %vm1209_vm14, %vm1208_vm11  ;;  %vm1217_vm9 = vnez %v1171_v30  ;;  %vm1218_vm14 = vnez %v1183_v33 }
  0x5c   : > { %vm947_vm12 = vmor %vm210_vm15, %vm214_vm7  ;;  %vm1219_vm7 = vnez %v1179_v32 }
  0x5d   : > { %v1211_v40 = vsel %vm947_vm12, 4294967295, %v1210_v40  ;;  %vm251_vm13 = vmor %vm1213_vm3, %vm1212_vm6  ;;  %vm1220_vm12 = vnez %v1187_v35  ;;  %vm1221_vm3 = vnez %v1185_v34 }
  0x5e   : > { %vm955_vm0 = vmor %vm211_vm1, %vm215_vm5  ;;  %vm1222_vm1 = vnez %v1191_v37  ;;  %vm1223_vm5 = vnez %v1189_v36 }
  0x5f   : > { %v1215_v41 = vsel %vm955_vm0, 4294967295, %v1214_v41  ;;  %vm252_vm11 = vmor %vm1217_vm9, %vm1216_vm10  ;;  %vm1224_vm9 = vnez %v1115_v14  ;;  %vm1225_vm10 = vnez %v1117_v15 }
  0x60   : > { %vm253_vm15 = vmor %vm1219_vm7, %vm1218_vm14 }
  0x61   : > { %vm254_vm6 = vmor %vm1221_vm3, %vm1220_vm12  ;;  %vm1229_vm3 = vnez %v1119_v16  ;;  %vm1230_vm12 = vnez %v1122_v17 }
  0x62   : > { %vm255_vm0 = vmor %vm1223_vm5, %vm1222_vm1 }
  0x63   : > { %vm1226_vm7 = vmor %vm1224_vm9, %vm1225_vm10  ;;  %vm1234_vm9 = vnez %v1126_v18  ;;  %vm1235_vm10 = vnez %v1128_v19 }
  0x64   : > { %vm980_vm14 = vmor %vm1226_vm7, %vm248_vm2 }
  0x65   : > { %v1228_v42 = vsel %vm980_vm14, 4294967295, %v1227_v42  ;;  %vm1231_vm1 = vmor %vm1229_vm3, %vm1230_vm12  ;;  %vm1239_vm14 = vnez %v1132_v20 }
  0x66   : > { %vm989_vm5 = vmor %vm1231_vm1, %vm249_vm4  ;;  %vm1240_vm4 = vnez %v1135_v21  ;;  %vm1244_vm1 = vnez %v1203_v38 }
  0x67   : > { %vm1236_vm2 = vmor %vm1234_vm9, %vm1235_vm10  ;;  %vm1245_vm9 = vnez %v1207_v39 }
  0x68   : > { %vm999_vm7 = vmor %vm1236_vm2, %vm250_vm8  ;;  %vm152_vm2 = vcmp.le.u32.totalorder %v381_v44, 9 }
  0x69   : > { %vm1241_vm3 = vmor %vm1239_vm14, %vm1240_vm4  ;;  %vm153_vm4 = vcmp.le.u32.totalorder %v382_v46, 9  ;;  %v268_v54 = vsel %vm152_vm2, 1, %v553_v53 }
  0x6a   : > { %vm1009_vm12 = vmor %vm1241_vm3, %vm251_vm13  ;;  %vm1248_vm13 = vnez %v1211_v40  ;;  %vm1251_vm3 = vnez %v1215_v41  ;;  %v269_v56 = vsel %vm153_vm4, 1, %v553_v53 }
  0x6b   : > { %v1243_v47 = vsel %vm1009_vm12, 4294967295, %v1242_v47  ;;  %vm260_vm8 = vmor %vm252_vm11, %vm1244_vm1  ;;  %vm154_vm11 = vcmp.le.u32.totalorder %v383_v48, 9 }
  0x6c   : > { %vm1019_vm10 = vmor %vm253_vm15, %vm1245_vm9  ;;  %vm1254_vm15 = vnez %v1228_v42  ;;  %vm155_vm9 = vcmp.le.u32.totalorder %v384_v49, 9  ;;  %v270_v59 = vsel %vm154_vm11, 1, %v553_v53 }
  0x6d   : > { %vm1025_vm14 = vmor %vm254_vm6, %vm1248_vm13  ;;  %v271_v62 = vsel %vm155_vm9, 1, %v553_v53 }
  0x6e   : > { %vm1031_vm12 = vmor %vm255_vm0, %vm1251_vm3 }
  0x6f   : > { %vm264_vm1 = vmor %vm1254_vm15, %vm260_vm8  ;;  %vm1255_vm8 = vnez %v1243_v47 }
  0x70   : > { %vm265_vm6 = vmor %vm989_vm5, %vm1019_vm10  ;;  %v272_v55 = vsel %vm264_vm1, 1, %v553_v53 }
  0x71   : > { %vm266_vm0 = vmor %vm999_vm7, %vm1025_vm14  ;;  %v273_v57 = vsel %vm265_vm6, 1, %v553_v53  ;;  %v276_v58 = vshll.u32 %v272_v55, 1 }
  0x72   : > { %vm267_vm13 = vmor %vm1255_vm8, %vm1031_vm12  ;;  %v274_v60 = vsel %vm266_vm0, 1, %v553_v53  ;;  %v277_v61 = vshll.u32 %v273_v57, 1 }
  0x73   : > { %v275_v63 = vsel %vm267_vm13, 1, %v553_v53  ;;  %v278_v0 = vshll.u32 %v274_v60, 1  ;;  %v280_v1 = vor.u32 %v276_v58, %v268_v54 }
  0x74   : > { %v279_v2 = vshll.u32 %v275_v63, 1  ;;  %v281_v3 = vor.u32 %v277_v61, %v269_v56 }
  0x75   : > { %v282_v4 = vor.u32 %v278_v0, %v270_v59 }
  0x76   : > { %v283_v5 = vor.u32 %v279_v2, %v271_v62  ;;  %v284_v6 = vpack.c.b16 %v281_v3, %v280_v1 }
  0x78   : > { %v285_v7 = vpack.c.b16 %v283_v5, %v282_v4 }
  0x7a   : > { %v286_v8 = vpack.c.b8 %v285_v7, %v284_v6 }
  0x7c   : > { %287 = vst [vmem:[%s134_s25] sm:$0xff] %v286_v8 }
  0x7d   : > { %495 = shalt.err (!%p492_p2)
}
  0x7e   : > { %s496_s14 = scalar_lea.hbm %s1056_s3, 128  ;;  %s500_s21 = scalar_lea.hbm %s1099_s1, 256 }
  0x7f   : > { %p497_p4 = scmp.ne.s32.totalorder %s1056_s3, %s496_s14  ;;  %p501_p9 = scmp.lt.u32.totalorder %s1056_s3, %s1099_s1 }
  0x80   : > { %p502_p1 = scmp.lt.u32.totalorder %s500_s21, %s496_s14  ;;  %p504_p6 = scmp.lt.u32.totalorder %s496_s14, %s1056_s3 }
  0x81   : > { %p498_p5 = pnand %p497_p4, %p1256_p11 }
  0x82   : > { %p503_p3 = por %p502_p1, %p501_p9 }
  0x83   : > { %p499_p7 = pneg %p498_p5 }
  0x84   : > { %p505_p12 = por %p504_p6, %p503_p3 }
  0x86   : > { %p506_p13 = pnand %p505_p12, %p499_p7 }
  0x88   : > { %509 = shalt.err (!%p506_p13)
}
  0x89   : > { %405 = dma.vmem_to_hbm [thread:$0]  (%p1256_p11), %s1051_s27, 128, %s1056_s3, %s289_s4  }
  0x8a PF: > { %s314_s24 = sand.u32 1, %s536_s6   ;;  %p1257_p8 = scmp.ne.s32.totalorder %s1112_s19, 0 }
  0x8b   : > { %p1258_p10 = scmp.ge.s32.totalorder %s548_s9, 2  ;;  %s315_s26 = scalar_lea.sflag [#allocation4], %s314_s24 }
  0x8d   : > { %p412_p0 = pnand %p1258_p10, %p1257_p8 }
  0x8f   : > { %531 = dma.done.wait (!%p412_p0), %s315_s26, 128  }
  0x90   : > { %533 = vsyncadd (!%p412_p0), %s315_s26, 4294967168  ;;  %p14_p2 = scmp.ge.s32.totalorder %s590_s12, 4   ;;  %s1259_s6 = smov %s540_s7 }
  0x91   : > { %s1260_s7 = smov %s544_s8  ;;  %s1261_s8 = smov %s602_s15 }
  0x92   : > { %s1262_s9 = smov %s590_s12  ;;  %16 = sbr.rel (!%p14_p2) target bundleno = 5 (0x5), region = 69 }
  0x99   :  { %320 = vsyncpa [#allocation3], 1 }
  0x9a   :  { %322 = vsyncpa [#allocation3 + $0x1], 1 }
  0x9b   :  { %323 = vsyncpa [#allocation4], 1 }
  0x9c   :  { %325 = vsyncpa [#allocation4 + $0x1], 1 }

</bundles_post_ra>
